<compile_context>
chip_gen: v5e
topology: v5e:2x2
jax: 0.10.0
libtpu: 0.0.40
codegen_flags: <defaults>
</compile_context>

<pallas_src>
import jax
import jax.numpy as jnp
from jax.experimental import pallas as pl
from jax.experimental.pallas import tpu as pltpu

_LANES = 128
_MAX_TILE_ROWS = 2048  # 2048 x 128 f32 = 1 MiB per input block


def _l1_block_sum_kernel(p_ref, t_ref, o_ref):
    """Writes sum(|p - t|) of this block's tile into its own SMEM scalar slot."""
    p = p_ref[...]
    t = t_ref[...]
    if p.dtype != jnp.float32:  # only cast when inputs are not already f32
        p = p.astype(jnp.float32)
        t = t.astype(jnp.float32)
    o_ref[0, 0] = jnp.sum(jnp.abs(p - t))


def l1_loss(predict: jax.Array, target: jax.Array) -> jax.Array:
    """Equivalent of nn.L1Loss(reduction='sum')(predict, target) / predict.shape[0]."""
    assert predict.shape == target.shape, "L1Loss requires matching shapes"
    batch = predict.shape[0]

    p_flat = predict.reshape(-1)
    t_flat = target.reshape(-1)
    n = p_flat.shape[0]

    rem = n % _LANES
    if rem:
        # Ragged (non-multiple-of-128) fallback: pad at most 127 zeros so the
        # lane-dense reshape is possible (|0-0| = 0, sum unchanged).
        pad = _LANES - rem
        p_flat = jnp.pad(p_flat, (0, pad))
        t_flat = jnp.pad(t_flat, (0, pad))

    rows = p_flat.shape[0] // _LANES
    # Layout-preserving reshape: no copy when rem == 0.
    p2 = p_flat.reshape(rows, _LANES)
    t2 = t_flat.reshape(rows, _LANES)

    # Block sizing: single full-array block for small inputs, otherwise
    # 2048-row blocks; only whole blocks go through the kernel.
    tile_rows = rows if rows <= _MAX_TILE_ROWS else _MAX_TILE_ROWS
    num_blocks = rows // tile_rows
    rows_tail = rows - num_blocks * tile_rows  # 0 .. tile_rows-1 leftover rows

    itemsize = jnp.dtype(predict.dtype).itemsize
    cost = pl.CostEstimate(
        flops=3 * n,  # sub + abs + add per element
        transcendentals=0,
        bytes_accessed=2 * n * itemsize + num_blocks * 4,
    )

    partials = pl.pallas_call(
        _l1_block_sum_kernel,
        out_shape=jax.ShapeDtypeStruct((num_blocks, 1), jnp.float32),
        grid_spec=pltpu.PrefetchScalarGridSpec(
            num_scalar_prefetch=0,
            grid=(num_blocks,),
            in_specs=[
                pl.BlockSpec((tile_rows, _LANES), lambda i: (i, 0)),
                pl.BlockSpec((tile_rows, _LANES), lambda i: (i, 0)),
            ],
            out_specs=pl.BlockSpec((1, 1), lambda i: (i, 0), memory_space=pltpu.SMEM),
        ),
        compiler_params=pltpu.CompilerParams(
            # Fully independent per-block partial sums -> parallel grid axis
            # (lets v7x shard the reduction across its two TensorCores).
            dimension_semantics=("parallel",),
        ),
        cost_estimate=cost,
    )(p2, t2)

    total = jnp.sum(partials)

    if rows_tail:
        # Remainder rows (< 2048 rows, <= ~1 MiB): plain-JAX reduce, negligible.
        start = num_blocks * tile_rows
        p_tail = p2[start:, :].astype(jnp.float32)
        t_tail = t2[start:, :].astype(jnp.float32)
        total = total + jnp.sum(jnp.abs(p_tail - t_tail))

    return (total / jnp.float32(batch)).astype(jnp.float32)


if __name__ == "__main__":
    key = jax.random.PRNGKey(0)
    k1, k2 = jax.random.split(key)
    # NCHW, small shapes: batch=2, channels=4, spatial=16x16
    predict = jax.random.normal(k1, (2, 4, 16, 16), dtype=jnp.float32)
    target = jax.random.normal(k2, (2, 4, 16, 16), dtype=jnp.float32)

    loss = jax.block_until_ready(l1_loss(predict, target))

    # Reference check (plain JAX)
    ref = jnp.sum(jnp.abs(predict - target)) / predict.shape[0]
    assert jnp.allclose(loss, ref, rtol=1e-5, atol=1e-5), (loss, ref)

    print("KERNEL_OK")
</pallas_src>

<mosaic_0001>
module attributes {stable_mosaic.version = 11 : i64} {
  func.func @_l1_block_sum_kernel(%arg0: i32, %arg1: memref<16x128xf32, #tpu.memory_space<vmem>>, %arg2: memref<16x128xf32, #tpu.memory_space<vmem>>, %arg3: memref<1x1xf32, #tpu.memory_space<smem>>) attributes {dimension_semantics = [#tpu.dimension_semantics<parallel>], iteration_bounds = array<i64: 1>, scalar_prefetch = 0 : i64, scratch_operands = 0 : i64, tpu.core_type = #tpu.core_type<tc>, window_params = [{transform_indices = @transform_0, window_bounds = array<i64: 16, 128>}, {transform_indices = @transform_1, window_bounds = array<i64: 16, 128>}, {transform_indices = @transform_2, window_bounds = array<i64: 1, 1>}]} {
    %c0 = arith.constant 0 : index
    %c0_0 = arith.constant 0 : index
    %0 = vector.load %arg1[%c0, %c0_0] : memref<16x128xf32, #tpu.memory_space<vmem>>, vector<16x128xf32>
    %c0_1 = arith.constant 0 : index
    %c0_2 = arith.constant 0 : index
    %1 = vector.load %arg2[%c0_1, %c0_2] : memref<16x128xf32, #tpu.memory_space<vmem>>, vector<16x128xf32>
    %2 = arith.subf %0, %1 : vector<16x128xf32>
    %3 = math.absf %2 : vector<16x128xf32>
    %4 = vector.shape_cast %3 : vector<16x128xf32> to vector<1x16x128xf32>
    %cst = arith.constant dense<0.000000e+00> : vector<1xf32>
    %5 = vector.multi_reduction <add>, %4, %cst [1, 2] : vector<1x16x128xf32> to vector<1xf32>
    %6 = vector.shape_cast %5 : vector<1xf32> to vector<1x1x1xf32>
    %7 = vector.extract %6[0, 0, 0] : f32 from vector<1x1x1xf32>
    %c0_3 = arith.constant 0 : index
    %c0_4 = arith.constant 0 : index
    %8 = memref.load %arg3[%c0_3, %c0_4] : memref<1x1xf32, #tpu.memory_space<smem>>
    memref.store %7, %arg3[%c0_3, %c0_4] : memref<1x1xf32, #tpu.memory_space<smem>>
    return
  }
  func.func @transform_0(%arg0: i32) -> (i32, i32) {
    %c0_i32 = arith.constant 0 : i32
    %c0_i32_0 = arith.constant 0 : i32
    return %arg0, %c0_i32 : i32, i32
  }
  func.func @transform_1(%arg0: i32) -> (i32, i32) {
    %c0_i32 = arith.constant 0 : i32
    %c0_i32_0 = arith.constant 0 : i32
    return %arg0, %c0_i32 : i32, i32
  }
  func.func @transform_2(%arg0: i32) -> (i32, i32) {
    %c0_i32 = arith.constant 0 : i32
    %c0_i32_0 = arith.constant 0 : i32
    return %arg0, %c0_i32 : i32, i32
  }
}

</mosaic_0001>

<bundles_post_ra>
// kernel: tpu_custom_call.1
= control target key start
LH: loop header
LB: loop body
LE: loop exit
PB: predicated region body
PF: predicated region fallthrough
CT: control target
= control target key end

     0   :  { %7 = vsyncpa [#allocation3], 0  ;;  %s183_s0 = inlined_call_operand.hbm [shape: f32[16,128], index: 0, kind: input, shape index: {}]   ;;  %s184_s1 = inlined_call_operand.hbm [shape: f32[16,128], index: 1, kind: input, shape index: {}]   ;;  %s185_s2 = inlined_call_operand.hbm [shape: f32[1,1], index: 2, kind: output, shape index: {}]  }
   0x1   :  { %8 = vsyncpa [#allocation6], 0 }
   0x2   :  { %9 = vsyncpa [#allocation4], 0  ;;  %s14_s11 = sshll.u32 %s183_s0, 4  ;;  %s154_s12 = smov [#allocation2]   ;;  %s15_s11 = int_to_ptr.hbm [resolvable:$true] %s14_s11 }
   0x3   :  { %s16_s13 = sshll.u32 %s154_s12, 4  ;;  %s27_s16 = sshll.u32 %s184_s1, 4  ;;  %s17_s13 = int_to_ptr.vmem [resolvable:$true] %s16_s13  ;;  %s28_s16 = int_to_ptr.hbm [resolvable:$true] %s27_s16 }
   0x4   :  { %s155_s17 = smov 128   ;;  %s156_s18 = smov 8  }
   0x5   :  { %22 = dma.hbm_to_vmem [thread:$0]  %s15_s11, 256, %s17_s13, [#allocation3], %s155_s17, %s155_s17, %s156_s18  }
   0x6   :  { %s157_s19 = smov [#allocation5]  }
   0x7   :  { %s29_s20 = sshll.u32 %s157_s19, 4  ;;  %s30_s20 = int_to_ptr.vmem [resolvable:$true] %s29_s20 }
   0x8   :  { %35 = dma.hbm_to_vmem [thread:$0]  %s28_s16, 256, %s30_s20, [#allocation6], %s155_s17, %s155_s17, %s156_s18  }
   0x9   :  { %148 = dma.done.wait [#allocation3], 256  }
   0xa   :  { %149 = vsyncadd [#allocation3], 4294967040 }
   0xb   :  { %150 = dma.done.wait [#allocation6], 256  }
   0xc   :  { %151 = vsyncadd [#allocation6], 4294967040  ;;  %v44_v0 = vld [vmem:[#allocation2] sm:$0xff]  ;;  %v45_v1 = vld [vmem:[#allocation2 + $0x8] sm:$0xff]  ;;  %s69_s21 = sshll.u32 %s185_s2, 4  ;;  %s158_s23 = smov [#allocation7]   ;;  %s70_s21 = int_to_ptr.hbm [resolvable:$true] %s69_s21 }
   0xd   :  { %v46_v2 = vld [vmem:[#allocation5] sm:$0xff]  ;;  %v47_v3 = vld [vmem:[#allocation5 + $0x8] sm:$0xff] }
   0xe   :  { %v48_v4 = vsub.f32 %v44_v0, %v46_v2  ;;  %v49_v5 = vsub.f32 %v45_v1, %v47_v3 }
  0x10   :  { %v50_v6 = vand.u32 2147483647, %v48_v4  ;;  %v51_v7 = vand.u32 2147483647, %v49_v5 }
  0x12   :  { %v52_v8 = vadd.f32 %v51_v7, %v50_v6 }
  0x14   :  { %53 = vadd.xlane.f32.xlu0 %v52_v8 }
  0x87   :  { %v54_v9 = vpop.xlane.xlu0 %53 }
  0x88   :  { %v55_v10 = vrot.slane %v54_v9, 4 }
  0x8a   :  { %v56_v11 = vadd.f32 %v55_v10, %v54_v9 }
  0x8c   :  { %v57_v12 = vrot.slane %v56_v11, 2 }
  0x8e   :  { %v58_v13 = vadd.f32 %v57_v12, %v56_v11 }
  0x90   :  { %v59_v14 = vrot.slane %v58_v13, 1 }
  0x92   :  { %v60_v15 = vadd.f32 %v59_v14, %v58_v13 }
  0x94   :  { %81 = vpush %v60_v15 }
  0xc5   :  { %s82_s22 = spop %81 }
  0xc6   :  { %63 = sst [smem:[#allocation7]] %s82_s22 }
  0xc7   :  { %72 = dma.smem_to_hbm %s158_s23, 16, %s70_s21, [#allocation4]  }
  0xc8   :  { %152 = dma.done.wait [#allocation4], 16  }
  0xc9   :  { %153 = vsyncadd [#allocation4], 4294967280 }
  0xca   :  { %77 = sfence }
  0xcb   :  { %78 = vsyncpa [#allocation3], 1 }
  0xcc   :  { %79 = vsyncpa [#allocation6], 1 }
  0xcd   :  { %80 = vsyncpa [#allocation4], 1 }

</bundles_post_ra>
